<compile_context>
chip_gen: v6e
topology: v6e:2x2x1
jax: 0.10.0
libtpu: 0.0.40
codegen_flags: <defaults>
</compile_context>

<pallas_src>
import jax
import jax.numpy as jnp
from jax.experimental import pallas as pl
from jax.experimental.pallas import tpu as pltpu

EMBEDDING_SIZE = 32
SELECTOR_EMBEDDING_VALUE = 50.0


def _round_up(x: int, m: int) -> int:
    return ((x + m - 1) // m) * m


def _node_embeddings_kernel(ids_ref, table_ref, out_ref):
    """One fused gather tile.

    ids_ref:   (tile_n, 2) int32    col 0 = vocab row, col 1 = selector row
                                    (already offset by vocab_size)
    table_ref: (k_pad, feat) f32    block-diagonal [vocab | selector] table
    out_ref:   (tile_n, feat) f32   exact-width output (feat = emb + 2)
    """
    tile_n = ids_ref.shape[0]
    k_pad = table_ref.shape[0]

    vid = ids_ref[:, 0:1]  # (tile_n, 1) int32
    sid = ids_ref[:, 1:2]  # (tile_n, 1) int32, points into selector rows

    # Two-hot row selector: one hit in the vocab block, one in the selector
    # block; the block-diagonal table turns the matmul into gather+concat.
    col = jax.lax.broadcasted_iota(jnp.int32, (tile_n, k_pad), 1)
    onehot = jnp.logical_or(col == vid, col == sid).astype(table_ref.dtype)

    # Single MXU pass emits the whole (embedding ++ selector) row.
    out_ref[...] = jnp.dot(
        onehot, table_ref[...], preferred_element_type=jnp.float32
    ).astype(out_ref.dtype)


def node_embeddings(vocab_ids, selector_ids, table, sel_table, *, tile_n=1024):
    """[num_nodes] ids -> [num_nodes, embedding_size + 2] features."""
    n = vocab_ids.shape[0]
    vocab_size, emb_size = table.shape
    n_sel, sel_dim = sel_table.shape            # (2, 2)
    feat = emb_size + sel_dim                   # 34
    k = vocab_size + n_sel                      # vocab_size + 2

    # Row count of the fused table rounded to the sublane multiple.
    k_pad = _round_up(k, 8)

    # Block-diagonal fused lookup table (zero padded rows are never selected).
    # NOTE: for a realistically large vocab, switch this one-hot matmul to a
    # true gather (scalar-prefetched ids + pl.Element row gather); irrelevant
    # at ~6 KiB here.
    big = jnp.zeros((k_pad, feat), table.dtype)
    big = big.at[:vocab_size, :emb_size].set(table)
    big = big.at[vocab_size:k, emb_size:feat].set(sel_table.astype(table.dtype))

    # Pack ids; selector ids are pre-offset into the selector block rows.
    ids = jnp.stack(
        [vocab_ids.astype(jnp.int32),
         selector_ids.astype(jnp.int32) + vocab_size],
        axis=1,
    )

    # Tile size: multiple of 8 (sublane), no larger than needed.
    tile_n = _round_up(max(8, min(tile_n, n)), 8)
    grid_steps = (n + tile_n - 1) // tile_n
    n_ids_pad = grid_steps * tile_n
    if n_ids_pad != n:
        # Pad ids so every id block is fully in-bounds; the corresponding
        # output rows fall in the partial last block and are masked on store.
        ids = jnp.pad(ids, ((0, n_ids_pad - n), (0, 0)))

    out = pl.pallas_call(
        _node_embeddings_kernel,
        out_shape=jax.ShapeDtypeStruct((n, feat), table.dtype),
        grid_spec=pltpu.PrefetchScalarGridSpec(
            num_scalar_prefetch=0,
            grid=(grid_steps,),
            in_specs=[
                pl.BlockSpec((tile_n, 2), lambda i: (i, 0)),     # packed ids
                pl.BlockSpec((k_pad, feat), lambda i: (0, 0)),   # resident table
            ],
            out_specs=pl.BlockSpec((tile_n, feat), lambda i: (i, 0)),
        ),
        compiler_params=pltpu.CompilerParams(
            dimension_semantics=("parallel",),  # shard grid steps across v7x TCs
        ),
    )(ids, big)

    return out


if __name__ == "__main__":
    vocab_size = 40
    num_nodes = 1000  # not a multiple of the tile -> exercises partial-block path

    key = jax.random.PRNGKey(0)
    k_table, k_vid, k_sid = jax.random.split(key, 3)

    # nn.Embedding default init: N(0, 1).
    embedding_table = jax.random.normal(
        k_table, (vocab_size, EMBEDDING_SIZE), dtype=jnp.float32
    )
    # Frozen selector embeddings: [[50, 0], [0, 50]].
    selector_table = jnp.array(
        [[SELECTOR_EMBEDDING_VALUE, 0.0], [0.0, SELECTOR_EMBEDDING_VALUE]],
        dtype=jnp.float32,
    )

    vocab_ids = jax.random.randint(k_vid, (num_nodes,), 0, vocab_size, dtype=jnp.int32)
    selector_ids = jax.random.randint(k_sid, (num_nodes,), 0, 2, dtype=jnp.int32)

    # tile_n=256 -> 4 grid steps, ragged last output block (768..999 valid).
    out = node_embeddings(
        vocab_ids, selector_ids, embedding_table, selector_table, tile_n=256
    )
    out = jax.block_until_ready(out)

    # Pure-JAX reference for correctness.
    ref = jnp.concatenate(
        [embedding_table[vocab_ids], selector_table[selector_ids]], axis=1
    )
    assert out.shape == (num_nodes, EMBEDDING_SIZE + 2)
    assert jnp.allclose(out, ref, atol=1e-6), "mismatch vs reference"

    print("KERNEL_OK")
</pallas_src>

<mosaic_0001>
module attributes {stable_mosaic.version = 11 : i64} {
  func.func @_node_embeddings_kernel(%arg0: i32, %arg1: memref<256x2xi32, #tpu.memory_space<vmem>>, %arg2: memref<48x34xf32, #tpu.memory_space<vmem>>, %arg3: memref<256x34xf32, #tpu.memory_space<vmem>>) attributes {dimension_semantics = [#tpu.dimension_semantics<parallel>], iteration_bounds = array<i64: 4>, scalar_prefetch = 0 : i64, scratch_operands = 0 : i64, tpu.core_type = #tpu.core_type<tc>, window_params = [{transform_indices = @transform_0, window_bounds = array<i64: 256, 2>}, {pipeline_mode = #tpu.pipeline_mode<synchronous>, transform_indices = @transform_1, window_bounds = array<i64: 48, 34>}, {transform_indices = @transform_2, window_bounds = array<i64: 256, 34>}]} {
    %c0 = arith.constant 0 : index
    %c0_0 = arith.constant 0 : index
    %0 = vector.load %arg1[%c0, %c0_0] : memref<256x2xi32, #tpu.memory_space<vmem>>, vector<256x1xi32>
    %c0_1 = arith.constant 0 : index
    %c1 = arith.constant 1 : index
    %1 = vector.load %arg1[%c0_1, %c1] : memref<256x2xi32, #tpu.memory_space<vmem>>, vector<256x1xi32>
    %2 = tpu.iota {dimensions = array<i32: 1>} : vector<256x48xi32>
    %3 = vector.broadcast %0 : vector<256x1xi32> to vector<256x48xi32>
    %4 = arith.cmpi eq, %2, %3 : vector<256x48xi32>
    %5 = vector.broadcast %1 : vector<256x1xi32> to vector<256x48xi32>
    %6 = arith.cmpi eq, %2, %5 : vector<256x48xi32>
    %7 = arith.ori %4, %6 : vector<256x48xi1>
    %8 = arith.extui %7 : vector<256x48xi1> to vector<256x48xi32>
    %9 = arith.sitofp %8 : vector<256x48xi32> to vector<256x48xf32>
    %c0_2 = arith.constant 0 : index
    %c0_3 = arith.constant 0 : index
    %10 = vector.load %arg2[%c0_2, %c0_3] : memref<48x34xf32, #tpu.memory_space<vmem>>, vector<48x34xf32>
    %cst = arith.constant dense<0.000000e+00> : vector<256x34xf32>
    %11 = tpu.matmul %9, %10, %cst {dimension_numbers = #tpu.dot_dimension_numbers<[1], [0], [0], [1], [0, 0, 1, 1], [], []>} : vector<256x48xf32>, vector<48x34xf32>, vector<256x34xf32> -> vector<256x34xf32>
    %c0_4 = arith.constant 0 : index
    %c0_5 = arith.constant 0 : index
    %12 = vector.load %arg3[%c0_4, %c0_5] : memref<256x34xf32, #tpu.memory_space<vmem>>, vector<256x34xf32>
    tpu.vector_store %arg3[%c0_4, %c0_5], %11 {strides = array<i32>} : memref<256x34xf32, #tpu.memory_space<vmem>>, vector<256x34xf32>,
    return
  }
  func.func @transform_0(%arg0: i32) -> (i32, i32) {
    %c0_i32 = arith.constant 0 : i32
    %c0_i32_0 = arith.constant 0 : i32
    return %arg0, %c0_i32 : i32, i32
  }
  func.func @transform_1(%arg0: i32) -> (i32, i32) {
    %c0_i32 = arith.constant 0 : i32
    %c0_i32_0 = arith.constant 0 : i32
    %c0_i32_1 = arith.constant 0 : i32
    return %c0_i32, %c0_i32_0 : i32, i32
  }
  func.func @transform_2(%arg0: i32) -> (i32, i32) {
    %c0_i32 = arith.constant 0 : i32
    %c0_i32_0 = arith.constant 0 : i32
    return %arg0, %c0_i32 : i32, i32
  }
}

</mosaic_0001>

<bundles_post_ra>
// kernel: tpu_custom_call.1
= control target key start
LH: loop header
LB: loop body
LE: loop exit
PB: predicated region body
PF: predicated region fallthrough
CT: control target
= control target key end

     0   :  { %s1663_s9 = smov 0   ;;  %s1665_s10 = smov 0   ;;  %s2183_s0 = inlined_call_operand.vmem [shape: s32[1024,2], index: 0, kind: input, shape index: {}]   ;;  %s2184_s1 = inlined_call_operand.vmem [shape: f32[48,34], index: 1, kind: input, shape index: {}]   ;;  %s2185_s2 = inlined_call_operand.vmem [shape: f32[1000,34], index: 2, kind: output, shape index: {}]  }
   0x1   :  { %s1667_s11 = smov 0  }
   0x2 LB: > { %s1676_s12 = sadd.s32 4294967295, %s1611_s11   ;;  %s1678_s13 = sadd.s32 1, %s1611_s11   ;;  %s1611_s11 = sphi %s1667_s11, %s2194_s11   ;;  %s1607_s10 = sphi %s1665_s10, %s2193_s10   ;;  %s1603_s9 = sphi %s1663_s9, %s2192_s9  }
   0x3   : > { %s63_s14 = ssub.s32 %s1611_s11, %s1678_s13  ;;  %s66_s15 = sadd.s32 1, %s1607_s10 }
   0x4   : > { %p64_p0 = scmp.eq.s32.totalorder %s63_s14, 0  ;;  %p76_p1 = scmp.ne.s32.totalorder %s1607_s10, %s1603_s9 }
   0x5   : > { %p77_p2 = scmp.eq.s32.totalorder %s1676_s12, 3  ;;  %p1235_p3 = scmp.ge.s32.totalorder %s1611_s11, 1 }
   0x6   : > { %s1686_s16 = scalar_select %p64_p0, %s1607_s10, %s66_s15  }
   0x7   : > { %p1688_p4 = por %p77_p2, %p76_p1  ;;  %p113_p5 = scmp.lt.s32.totalorder %s1611_s11, 5 }
   0x9   : > { %p114_p6 = pnand %p1235_p3, %p113_p5 }
   0xa   : > { %s1693_s18 = sshll.u32 (!%p114_p6), %s1676_s12, 5  ;;  %s131_s8 = sand.u32 (!%p114_p6), 1, %s1603_s9  }
   0xb   : > { %117 = sbr.rel (%p114_p6) target bundleno = 574 (0x23e), region = 28  ;;  %p135_p7 = scmp.lt.s32.totalorder (!%p114_p6), %s1693_s18, 127 }
   0xc   : > { %s1236_s11 = sshll.u32 (!%p114_p6), %s131_s8, 8 }
   0xd   : > { %s1978_s14 = scalar_lea.vmem (!%p114_p6), [#allocation2], %s1236_s11  }
  0x10   : > { %v1645_v0 = vmov 1   ;;  %v1646_v1 = vmov 0   ;;  %s136_s19 = scalar_select %p135_p7, %s1693_s18, 127  ;;  %v536_v6 = vld [vmem:[%s2184_s1 + $0x28] sm:$0xff]  ;;  %v535_v7 = vld [vmem:[%s2184_s1 + $0x20] sm:$0xff]  ;;  %v534_v9 = vld [vmem:[%s2184_s1 + $0x18] sm:$0xff]  ;;  %v177_v35 = vlaneseq }
  0x11   : > { %1525 = vset.pattern.permute.xlu1 %v1645_v0  ;;  %1524 = vset.pattern.permute.xlu0 %v1646_v1  ;;  %v533_v10 = vld [vmem:[%s2184_s1 + $0x10] sm:$0xff]  ;;  %v532_v12 = vld [vmem:[%s2184_s1 + $0x8] sm:$0xff]  ;;  %v531_v14 = vld [vmem:[%s2184_s1] sm:$0xff]  ;;  %vm537_vm2 = vcmask 392192   ;;  %v1647_v39 = vmov 0.0   ;;  %s900_s9 = ssub.s32 (%p1688_p4), 125, %s1693_s18 }
  0x12   : > { %s1238_s20 = sshll.u32 %s136_s19, 3  ;;  %1421 = vmatprep.subr.mxu1 %v536_v6  ;;  %1361 = vmatprep.subr.mxu0 %v536_v6  ;;  %v1787_v36 = vand.u32 127, %v177_v35  ;;  %s1320_s15 = sshll.u32 (%p1688_p4), %s1676_s12, 8 }
  0x13   : > { %s1702_s23 = scalar_lea.vmem %s2183_s0, %s1238_s20  ;;  %1427 = vmatpush3.msra.mxu1 %v536_v6  ;;  %1362 = vmatpush3.msra.mxu0 %v536_v6  ;;  %p901_p8 = scmp.lt.s32.totalorder (%p1688_p4), %s900_s9, 32 }
  0x14   : > { %v145_v2 = vld [vmem:[%s1702_s23] sm:$0xff]  ;;  %v1707_v4 = vld [vmem:[%s1702_s23 + $0x8] sm:$0xff]  ;;  %v163_v8 = vld [vmem:[%s1702_s23 + $0x90] sm:$0xff]  ;;  %1422 = vmatprep.subr.mxu1 %v535_v7  ;;  %1363 = vmatprep.subr.mxu0 %v535_v7  ;;  %s2051_s21 = scalar_lea.vmem (%p1688_p4), %s2185_s2, %s1320_s15  }
  0x15   : > { %308 = vperm.xlu1 %1525, %v145_v2   ;;  %180 = vperm.xlu0 %1524, %v145_v2   ;;  %v161_v3 = vld [vmem:[%s1702_s23 + $0x80] sm:$0xff]  ;;  %v162_v5 = vld [vmem:[%s1702_s23 + $0x88] sm:$0xff]  ;;  %v1727_v11 = vld [vmem:[%s1702_s23 + $0x18] sm:$0xff] }
  0x16   : > { %1428 = vmatpush3.msra.mxu1 %v535_v7  ;;  %v147_v13 = vld [vmem:[%s1702_s23 + $0x10] sm:$0xff]  ;;  %v165_v15 = vld [vmem:[%s1702_s23 + $0xa0] sm:$0xff]  ;;  %1364 = vmatpush3.msra.mxu0 %v535_v7  ;;  %v150_v16 = vld [vmem:[%s1702_s23 + $0x28] sm:$0xff] }
  0x17   : > { %1423 = vmatprep.subr.mxu1 %v534_v9  ;;  %1365 = vmatprep.subr.mxu0 %v534_v9  ;;  %v167_v17 = vld [vmem:[%s1702_s23 + $0xb0] sm:$0xff]  ;;  %v152_v18 = vld [vmem:[%s1702_s23 + $0x38] sm:$0xff]  ;;  %v169_v20 = vld [vmem:[%s1702_s23 + $0xc0] sm:$0xff] }
  0x18   : > { %1429 = vmatpush3.msra.mxu1 %v534_v9  ;;  %1366 = vmatpush3.msra.mxu0 %v534_v9  ;;  %v164_v19 = vld [vmem:[%s1702_s23 + $0x98] sm:$0xff]  ;;  %v154_v21 = vld [vmem:[%s1702_s23 + $0x48] sm:$0xff]  ;;  %v149_v22 = vld [vmem:[%s1702_s23 + $0x20] sm:$0xff] }
  0x19   : > { %356 = vperm.xlu1 %1525, %v161_v3   ;;  %228 = vperm.xlu0 %1524, %v161_v3   ;;  %v1750_v23 = vld [vmem:[%s1702_s23 + $0xd0] sm:$0xff]  ;;  %v156_v24 = vld [vmem:[%s1702_s23 + $0x58] sm:$0xff]  ;;  %v1757_v25 = vld [vmem:[%s1702_s23 + $0xe0] sm:$0xff] }
  0x1a   : > { %1424 = vmatprep.subr.mxu1 %v533_v10  ;;  %1367 = vmatprep.subr.mxu0 %v533_v10  ;;  %v158_v26 = vld [vmem:[%s1702_s23 + $0x68] sm:$0xff]  ;;  %v1764_v28 = vld [vmem:[%s1702_s23 + $0xf0] sm:$0xff]  ;;  %v160_v29 = vld [vmem:[%s1702_s23 + $0x78] sm:$0xff] }
  0x1b   : > { %1430 = vmatpush3.msra.mxu1 %v533_v10  ;;  %1368 = vmatpush3.msra.mxu0 %v533_v10  ;;  %v166_v27 = vld [vmem:[%s1702_s23 + $0xa8] sm:$0xff]  ;;  %v151_v30 = vld [vmem:[%s1702_s23 + $0x30] sm:$0xff]  ;;  %v168_v31 = vld [vmem:[%s1702_s23 + $0xb8] sm:$0xff] }
  0x1c   : > { %1425 = vmatprep.subr.mxu1 %v532_v12  ;;  %1369 = vmatprep.subr.mxu0 %v532_v12  ;;  %v153_v32 = vld [vmem:[%s1702_s23 + $0x40] sm:$0xff]  ;;  %v170_v33 = vld [vmem:[%s1702_s23 + $0xc8] sm:$0xff]  ;;  %v155_v34 = vld [vmem:[%s1702_s23 + $0x50] sm:$0xff] }
  0x1d   : > { %1526 = vset.pattern.permute.xlu1 %v1646_v1  ;;  %183 = vperm.xlu0 %1524, %v1707_v4   ;;  %v172_v41 = vld [vmem:[%s1702_s23 + $0xd8] sm:$0xff]  ;;  %v157_v48 = vld [vmem:[%s1702_s23 + $0x60] sm:$0xff]  ;;  %v174_v56 = vld [vmem:[%s1702_s23 + $0xe8] sm:$0xff] }
  0x1e   : > { %231 = vperm.xlu1 %1526, %v162_v5   ;;  %1431 = vmatpush3.msra.mxu1 %v532_v12  ;;  %v159_v63 = vld [vmem:[%s1702_s23 + $0x70] sm:$0xff]  ;;  %v176_v9 = vld [vmem:[%s1702_s23 + $0xf8] sm:$0xff] }
  0x1f   : > { %1426 = vmatprep.subr.mxu1 %v531_v14  ;;  %1370 = vmatpush3.msra.mxu0 %v532_v12 }
  0x20   : > { %1432 = vmatpush3.msra.mxu1 %v531_v14  ;;  %1371 = vmatprep.subr.mxu0 %v531_v14 }
  0x21   : > { %234 = vperm.xlu0 %1524, %v163_v8   ;;  %1372 = vmatpush3.msra.mxu0 %v531_v14 }
  0x22   : > { %1527 = vset.pattern.permute.xlu1 %v1645_v0 }
  0x23   : > { %359 = vperm.xlu1 %1527, %v162_v5  }
  0x25   : > { %189 = vperm.xlu0 %1524, %v1727_v11  }
  0x27   : > { %1528 = vset.pattern.permute.xlu1 %v1646_v1 }
  0x28   : > { %186 = vperm.xlu1 %1528, %v147_v13  }
  0x29   : > { %240 = vperm.xlu0 %1524, %v165_v15  }
  0x2c   : > { %1529 = vset.pattern.permute.xlu1 %v1645_v0 }
  0x2d   : > { %314 = vperm.xlu1 %1529, %v147_v13   ;;  %195 = vperm.xlu0 %1524, %v150_v16  }
  0x31   : > { %362 = vperm.xlu1 %1529, %v163_v8   ;;  %246 = vperm.xlu0 %1524, %v167_v17  }
  0x35   : > { %1530 = vset.pattern.permute.xlu1 %v1646_v1  ;;  %201 = vperm.xlu0 %1524, %v152_v18  }
  0x36   : > { %237 = vperm.xlu1 %1530, %v164_v19  }
  0x39   : > { %252 = vperm.xlu0 %1524, %v169_v20  }
  0x3a   : > { %1531 = vset.pattern.permute.xlu1 %v1645_v0 }
  0x3b   : > { %365 = vperm.xlu1 %1531, %v164_v19  }
  0x3d   : > { %207 = vperm.xlu0 %1524, %v154_v21  }
  0x3f   : > { %1532 = vset.pattern.permute.xlu1 %v1646_v1 }
  0x40   : > { %192 = vperm.xlu1 %1532, %v149_v22  }
  0x41   : > { %258 = vperm.xlu0 %1524, %v1750_v23  }
  0x44   : > { %1533 = vset.pattern.permute.xlu1 %v1645_v0 }
  0x45   : > { %320 = vperm.xlu1 %1533, %v149_v22   ;;  %213 = vperm.xlu0 %1524, %v156_v24  }
  0x49   : > { %368 = vperm.xlu1 %1533, %v165_v15   ;;  %264 = vperm.xlu0 %1524, %v1757_v25  }
  0x4d   : > { %1534 = vset.pattern.permute.xlu1 %v1646_v1  ;;  %219 = vperm.xlu0 %1524, %v158_v26  }
  0x4e   : > { %243 = vperm.xlu1 %1534, %v166_v27  }
  0x51   : > { %270 = vperm.xlu0 %1524, %v1764_v28  }
  0x52   : > { %1535 = vset.pattern.permute.xlu1 %v1645_v0 }
  0x53   : > { %371 = vperm.xlu1 %1535, %v166_v27  }
  0x55   : > { %225 = vperm.xlu0 %1524, %v160_v29  }
  0x57   : > { %1536 = vset.pattern.permute.xlu1 %v1646_v1 }
  0x58   : > { %198 = vperm.xlu1 %1536, %v151_v30  }
  0x59   : > { %1554 = vset.pattern.permute.xlu0 %v1645_v0 }
  0x5a   : > { %311 = vperm.xlu0 %1554, %v1707_v4  }
  0x5c   : > { %1537 = vset.pattern.permute.xlu1 %v1645_v0 }
  0x5d   : > { %326 = vperm.xlu1 %1537, %v151_v30  }
  0x5e   : > { %317 = vperm.xlu0 %1554, %v1727_v11  }
  0x61   : > { %374 = vperm.xlu1 %1537, %v167_v17  }
  0x62   : > { %323 = vperm.xlu0 %1554, %v150_v16  }
  0x65   : > { %1538 = vset.pattern.permute.xlu1 %v1646_v1 }
  0x66   : > { %249 = vperm.xlu1 %1538, %v168_v31   ;;  %329 = vperm.xlu0 %1554, %v152_v18  }
  0x6a   : > { %1539 = vset.pattern.permute.xlu1 %v1645_v0  ;;  %335 = vperm.xlu0 %1554, %v154_v21  }
  0x6b   : > { %377 = vperm.xlu1 %1539, %v168_v31  }
  0x6e   : > { %341 = vperm.xlu0 %1554, %v156_v24  }
  0x6f   : > { %1540 = vset.pattern.permute.xlu1 %v1646_v1 }
  0x70   : > { %204 = vperm.xlu1 %1540, %v153_v32  }
  0x72   : > { %347 = vperm.xlu0 %1554, %v158_v26  }
  0x74   : > { %1541 = vset.pattern.permute.xlu1 %v1645_v0 }
  0x75   : > { %332 = vperm.xlu1 %1541, %v153_v32  }
  0x76   : > { %353 = vperm.xlu0 %1554, %v160_v29  }
  0x79   : > { %380 = vperm.xlu1 %1541, %v169_v20  }
  0x7d   : > { %1542 = vset.pattern.permute.xlu1 %v1646_v1 }
  0x7e   : > { %255 = vperm.xlu1 %1542, %v170_v33  }
  0x82   : > { %1543 = vset.pattern.permute.xlu1 %v1645_v0 }
  0x83   : > { %383 = vperm.xlu1 %1543, %v170_v33  }
  0x87   : > { %1544 = vset.pattern.permute.xlu1 %v1646_v1 }
  0x88   : > { %210 = vperm.xlu1 %1544, %v155_v34  }
  0x8c   : > { %1545 = vset.pattern.permute.xlu1 %v1645_v0 }
  0x8d   : > { %338 = vperm.xlu1 %1545, %v155_v34  }
  0x90   : > { %v309_v37 = vpop.permute.xlu1 %308  ;;  %v181_v38 = vpop.permute.xlu0 %180 }
  0x91   : > { %vm403_vm0 = vcmp.eq.s32.totalorder %v1787_v36, %v309_v37  ;;  %vm275_vm1 = vcmp.eq.s32.totalorder %v1787_v36, %v181_v38  ;;  %386 = vperm.xlu1 %1545, %v1750_v23  }
  0x92   : > { %vm435_vm3 = vmor %vm275_vm1, %vm403_vm0 }
  0x93   : > { %v1239_v40 = vsel %vm435_vm3, 1.0, %v1647_v39 }
  0x94   : > { %v357_v42 = vpop.permute.xlu1 %356  ;;  %1373 = vmatprep.mubr.msk.f32.mxu0 %vm537_vm2, %v1239_v40  ;;  %v229_v43 = vpop.permute.xlu0 %228 }
  0x95   : > { %vm419_vm4 = vcmp.eq.s32.totalorder %v1787_v36, %v357_v42  ;;  %vm291_vm5 = vcmp.eq.s32.totalorder %v1787_v36, %v229_v43  ;;  %1546 = vset.pattern.permute.xlu1 %v1646_v1 }
  0x96   : > { %261 = vperm.xlu1 %1546, %v172_v41   ;;  %vm451_vm6 = vmor %vm291_vm5, %vm419_vm4 }
  0x97   : > { %v1255_v44 = vsel %vm451_vm6, 1.0, %v1647_v39 }
  0x98   : > { %1397 = vmatprep.mubr.msk.f32.mxu1 %vm537_vm2, %v1255_v44  ;;  %v1800_v45 = vpop.permute.xlu0 %183 }
  0x99   : > { %v232_v46 = vpop.permute.xlu1 %231 }
  0x9a   : > { %1547 = vset.pattern.permute.xlu1 %v1645_v0  ;;  %vm292_vm7 = vcmp.eq.s32.totalorder %v1787_v36, %v232_v46 }
  0x9b   : > { %389 = vperm.xlu1 %1547, %v172_v41  }
  0x9c   : > { %v235_v47 = vpop.permute.xlu0 %234 }
  0x9d   : > { %vm293_vm10 = vcmp.eq.s32.totalorder %v1787_v36, %v235_v47 }
  0x9e   : > { %v360_v49 = vpop.permute.xlu1 %359 }
  0x9f   : > { %vm420_vm8 = vcmp.eq.s32.totalorder %v1787_v36, %v360_v49  ;;  %1548 = vset.pattern.permute.xlu1 %v1646_v1 }
  0xa0   : > { %vm452_vm9 = vmor %vm292_vm7, %vm420_vm8  ;;  %216 = vperm.xlu1 %1548, %v157_v48   ;;  %v1807_v50 = vpop.permute.xlu0 %189  ;;  %vm276_vm8 = vcmp.eq.s32.totalorder %v1787_v36, %v1800_v45 }
  0xa1   : > { %v1256_v51 = vsel %vm452_vm9, 1.0, %v1647_v39 }
  0xa2   : > { %1398 = vmatmul.mubr.msk.f32.vlgmr.msra.gmra.mxu1 %vm537_vm2, %v1256_v51 }
  0xa3   : > { %v1811_v52 = vpop.permute.xlu1 %186 }
  0xa4   : > { %1549 = vset.pattern.permute.xlu1 %v1645_v0  ;;  %v241_v53 = vpop.permute.xlu0 %240  ;;  %vm277_vm9 = vcmp.eq.s32.totalorder %v1787_v36, %v1811_v52 }
  0xa5   : > { %344 = vperm.xlu1 %1549, %v157_v48   ;;  %vm295_vm0 = vcmp.eq.s32.totalorder %v1787_v36, %v241_v53 }
  0xa8   : > { %v315_v54 = vpop.permute.xlu1 %314  ;;  %v1814_v55 = vpop.permute.xlu0 %195 }
  0xa9   : > { %392 = vperm.xlu1 %1549, %v1757_v25   ;;  %vm405_vm7 = vcmp.eq.s32.totalorder %v1787_v36, %v315_v54 }
  0xac   : > { %v363_v57 = vpop.permute.xlu1 %362  ;;  %v1819_v58 = vpop.permute.xlu0 %246 }
  0xad   : > { %vm421_vm11 = vcmp.eq.s32.totalorder %v1787_v36, %v363_v57  ;;  %1550 = vset.pattern.permute.xlu1 %v1646_v1 }
  0xae   : > { %vm453_vm12 = vmor %vm293_vm10, %vm421_vm11  ;;  %267 = vperm.xlu1 %1550, %v174_v56  }
  0xaf   : > { %v1257_v59 = vsel %vm453_vm12, 1.0, %v1647_v39  ;;  %vm437_vm10 = vmor %vm277_vm9, %vm405_vm7 }
  0xb0   : > { %1400 = vmatprep.mubr.msk.f32.mxu1 %vm537_vm2, %v1257_v59  ;;  %v1825_v60 = vpop.permute.xlu0 %201  ;;  %v1241_v21 = vsel %vm437_vm10, 1.0, %v1647_v39 }
  0xb1   : > { %v238_v61 = vpop.permute.xlu1 %237 }
  0xb2   : > { %1551 = vset.pattern.permute.xlu1 %v1645_v0  ;;  %vm294_vm13 = vcmp.eq.s32.totalorder %v1787_v36, %v238_v61 }
  0xb3   : > { %395 = vperm.xlu1 %1551, %v174_v56  }
  0xb4   : > { %v1828_v62 = vpop.permute.xlu0 %252 }
  0xb6   : > { %v366_v2 = vpop.permute.xlu1 %365 }
  0xb7   : > { %vm422_vm14 = vcmp.eq.s32.totalorder %v1787_v36, %v366_v2  ;;  %1552 = vset.pattern.permute.xlu1 %v1646_v1 }
  0xb8   : > { %vm454_vm15 = vmor %vm294_vm13, %vm422_vm14  ;;  %222 = vperm.xlu1 %1552, %v159_v63   ;;  %v1834_v3 = vpop.permute.xlu0 %207  ;;  %vm278_vm14 = vcmp.eq.s32.totalorder %v1787_v36, %v1807_v50 }
  0xb9   : > { %v1258_v4 = vsel %vm454_vm15, 1.0, %v1647_v39 }
  0xba   : > { %1401 = vmatmul.mubr.msk.f32.gmra.mxu1 %vm537_vm2, %v1258_v4 }
  0xbb   : > { %v193_v5 = vpop.permute.xlu1 %192 }
  0xbc   : > { %1553 = vset.pattern.permute.xlu1 %v1645_v0  ;;  %v1839_v6 = vpop.permute.xlu0 %258  ;;  %vm279_vm15 = vcmp.eq.s32.totalorder %v1787_v36, %v193_v5 }
  0xbd   : > { %350 = vperm.xlu1 %1553, %v159_v63  }
  0xc0   : > { %v321_v7 = vpop.permute.xlu1 %320  ;;  %v1841_v8 = vpop.permute.xlu0 %213 }
  0xc1   : > { %398 = vperm.xlu1 %1553, %v1764_v28   ;;  %vm407_vm12 = vcmp.eq.s32.totalorder %v1787_v36, %v321_v7 }
  0xc4   : > { %v369_v10 = vpop.permute.xlu1 %368  ;;  %v1846_v11 = vpop.permute.xlu0 %264 }
  0xc5   : > { %vm423_vm1 = vcmp.eq.s32.totalorder %v1787_v36, %v369_v10  ;;  %1555 = vset.pattern.permute.xlu1 %v1646_v1 }
  0xc6   : > { %vm455_vm3 = vmor %vm295_vm0, %vm423_vm1  ;;  %273 = vperm.xlu1 %1555, %v176_v9  }
  0xc7   : > { %v1259_v12 = vsel %vm455_vm3, 1.0, %v1647_v39  ;;  %vm439_vm0 = vmor %vm279_vm15, %vm407_vm12 }
  0xc8   : > { %1403 = vmatprep.mubr.msk.f32.mxu1 %vm537_vm2, %v1259_v12  ;;  %v1852_v13 = vpop.permute.xlu0 %219  ;;  %v1243_v25 = vsel %vm439_vm0, 1.0, %v1647_v39 }
  0xc9   : > { %v244_v14 = vpop.permute.xlu1 %243 }
  0xca   : > { %1556 = vset.pattern.permute.xlu1 %v1645_v0  ;;  %vm296_vm4 = vcmp.eq.s32.totalorder %v1787_v36, %v244_v14 }
  0xcb   : > { %401 = vperm.xlu1 %1556, %v176_v9  }
  0xcc   : > { %v1855_v15 = vpop.permute.xlu0 %270 }
  0xce   : > { %v372_v16 = vpop.permute.xlu1 %371 }
  0xcf   : > { %vm424_vm5 = vcmp.eq.s32.totalorder %v1787_v36, %v372_v16 }
  0xd0   : > { %vm456_vm6 = vmor %vm296_vm4, %vm424_vm5  ;;  %v1859_v1 = vpop.permute.xlu0 %225  ;;  %vm297_vm4 = vcmp.eq.s32.totalorder %v1787_v36, %v1819_v58 }
  0xd1   : > { %v1260_v17 = vsel %vm456_vm6, 1.0, %v1647_v39  ;;  %vm280_vm6 = vcmp.eq.s32.totalorder %v1787_v36, %v1814_v55 }
  0xd2   : > { %1404 = vmatmul.mubr.msk.f32.gmra.mxu1 %vm537_vm2, %v1260_v17 }
  0xd3   : > { %v199_v18 = vpop.permute.xlu1 %198 }
  0xd4   : > { %vm281_vm7 = vcmp.eq.s32.totalorder %v1787_v36, %v199_v18 }
  0xd5   : > { %v312_v0 = vpop.permute.xlu0 %311 }
  0xd6   : > { %vm404_vm11 = vcmp.eq.s32.totalorder %v1787_v36, %v312_v0 }
  0xd7   : > { %vm436_vm13 = vmor %vm276_vm8, %vm404_vm11 }
  0xd8   : > { %v1240_v19 = vsel %vm436_vm13, 1.0, %v1647_v39  ;;  %v327_v20 = vpop.permute.xlu1 %326  ;;  %vm282_vm13 = vcmp.eq.s32.totalorder %v1787_v36, %v1825_v60 }
  0xd9   : > { %1374 = vmatmul.mubr.msk.f32.vlgmr.msra.gmra.mxu0 %vm537_vm2, %v1240_v19  ;;  %v318_v22 = vpop.permute.xlu0 %317  ;;  %vm409_vm1 = vcmp.eq.s32.totalorder %v1787_v36, %v327_v20 }
  0xda   : > { %vm406_vm3 = vcmp.eq.s32.totalorder %v1787_v36, %v318_v22  ;;  %1376 = vmatprep.mubr.msk.f32.mxu0 %vm537_vm2, %v1241_v21  ;;  %vm441_vm8 = vmor %vm281_vm7, %vm409_vm1 }
  0xdb   : > { %vm438_vm5 = vmor %vm278_vm14, %vm406_vm3  ;;  %v1245_v29 = vsel %vm441_vm8, 1.0, %v1647_v39 }
  0xdc   : > { %v1242_v23 = vsel %vm438_vm5, 1.0, %v1647_v39  ;;  %v375_v24 = vpop.permute.xlu1 %374 }
  0xdd   : > { %vm425_vm9 = vcmp.eq.s32.totalorder %v1787_v36, %v375_v24  ;;  %1377 = vmatmul.mubr.msk.f32.gmra.mxu0 %vm537_vm2, %v1242_v23  ;;  %v324_v26 = vpop.permute.xlu0 %323 }
  0xde   : > { %vm457_vm10 = vmor %vm297_vm4, %vm425_vm9  ;;  %vm408_vm11 = vcmp.eq.s32.totalorder %v1787_v36, %v324_v26  ;;  %1379 = vmatprep.mubr.msk.f32.mxu0 %vm537_vm2, %v1243_v25  ;;  %vm284_vm4 = vcmp.eq.s32.totalorder %v1787_v36, %v1834_v3 }
  0xdf   : > { %v1261_v27 = vsel %vm457_vm10, 1.0, %v1647_v39  ;;  %vm440_vm12 = vmor %vm280_vm6, %vm408_vm11  ;;  %vm299_vm10 = vcmp.eq.s32.totalorder %v1787_v36, %v1828_v62 }
  0xe0   : > { %v1244_v28 = vsel %vm440_vm12, 1.0, %v1647_v39  ;;  %1406 = vmatprep.mubr.msk.f32.mxu1 %vm537_vm2, %v1261_v27 }
  0xe1   : > { %v250_v30 = vpop.permute.xlu1 %249  ;;  %1380 = vmatmul.mubr.msk.f32.gmra.mxu0 %vm537_vm2, %v1244_v28  ;;  %v330_v31 = vpop.permute.xlu0 %329 }
  0xe2   : > { %vm410_vm14 = vcmp.eq.s32.totalorder %v1787_v36, %v330_v31  ;;  %1382 = vmatprep.mubr.msk.f32.mxu0 %vm537_vm2, %v1245_v29  ;;  %vm298_vm0 = vcmp.eq.s32.totalorder %v1787_v36, %v250_v30 }
  0xe3   : > { %vm442_vm15 = vmor %vm282_vm13, %vm410_vm14 }
  0xe4   : > { %v1246_v32 = vsel %vm442_vm15, 1.0, %v1647_v39 }
  0xe5   : > { %1383 = vmatmul.mubr.msk.f32.gmra.mxu0 %vm537_vm2, %v1246_v32  ;;  %v336_v35 = vpop.permute.xlu0 %335 }
  0xe6   : > { %v378_v33 = vpop.permute.xlu1 %377  ;;  %vm412_vm5 = vcmp.eq.s32.totalorder %v1787_v36, %v336_v35 }
  0xe7   : > { %vm426_vm1 = vcmp.eq.s32.totalorder %v1787_v36, %v378_v33  ;;  %vm444_vm6 = vmor %vm284_vm4, %vm412_vm5 }
  0xe8   : > { %vm458_vm3 = vmor %vm298_vm0, %vm426_vm1  ;;  %v1248_v41 = vsel %vm444_vm6, 1.0, %v1647_v39  ;;  %vm286_vm1 = vcmp.eq.s32.totalorder %v1787_v36, %v1841_v8 }
  0xe9   : > { %v1262_v34 = vsel %vm458_vm3, 1.0, %v1647_v39  ;;  %v342_v47 = vpop.permute.xlu0 %341 }
  0xea   : > { %1407 = vmatmul.mubr.msk.f32.gmra.mxu1 %vm537_vm2, %v1262_v34  ;;  %vm414_vm0 = vcmp.eq.s32.totalorder %v1787_v36, %v342_v47 }
  0xeb   : > { %v205_v37 = vpop.permute.xlu1 %204  ;;  %vm446_vm3 = vmor %vm286_vm1, %vm414_vm0 }
  0xec   : > { %vm283_vm7 = vcmp.eq.s32.totalorder %v1787_v36, %v205_v37  ;;  %v1250_v51 = vsel %vm446_vm3, 1.0, %v1647_v39 }
  0xed   : > { %v348_v57 = vpop.permute.xlu0 %347 }
  0xf0   : > { %v333_v38 = vpop.permute.xlu1 %332 }
  0xf1   : > { %vm411_vm8 = vcmp.eq.s32.totalorder %v1787_v36, %v333_v38  ;;  %v354_v5 = vpop.permute.xlu0 %353 }
  0xf2   : > { %vm443_vm9 = vmor %vm283_vm7, %vm411_vm8  ;;  %vm301_vm7 = vcmp.eq.s32.totalorder %v1787_v36, %v1839_v6 }
  0xf3   : > { %v1247_v40 = vsel %vm443_vm9, 1.0, %v1647_v39 }
  0xf4   : > { %v381_v42 = vpop.permute.xlu1 %380  ;;  %1385 = vmatprep.mubr.msk.f32.mxu0 %vm537_vm2, %v1247_v40 }
  0xf5   : > { %vm427_vm11 = vcmp.eq.s32.totalorder %v1787_v36, %v381_v42  ;;  %1386 = vmatmul.mubr.msk.f32.gmra.mxu0 %vm537_vm2, %v1248_v41 }
  0xf6   : > { %vm459_vm12 = vmor %vm299_vm10, %vm427_vm11 }
  0xf7   : > { %v1263_v43 = vsel %vm459_vm12, 1.0, %v1647_v39 }
  0xf8   : > { %1409 = vmatprep.mubr.msk.f32.mxu1 %vm537_vm2, %v1263_v43 }
  0xf9   : > { %v256_v44 = vpop.permute.xlu1 %255 }
  0xfa   : > { %vm300_vm13 = vcmp.eq.s32.totalorder %v1787_v36, %v256_v44 }
  0xfe   : > { %v384_v45 = vpop.permute.xlu1 %383 }
  0xff   : > { %vm428_vm14 = vcmp.eq.s32.totalorder %v1787_v36, %v384_v45 }
 0x100   : > { %vm460_vm15 = vmor %vm300_vm13, %vm428_vm14  ;;  %vm416_vm13 = vcmp.eq.s32.totalorder %v1787_v36, %v348_v57  ;;  %vm288_vm14 = vcmp.eq.s32.totalorder %v1787_v36, %v1852_v13 }
 0x101   : > { %v1264_v46 = vsel %vm460_vm15, 1.0, %v1647_v39  ;;  %vm448_vm15 = vmor %vm288_vm14, %vm416_vm13 }
 0x102   : > { %1410 = vmatmul.mubr.msk.f32.gmra.mxu1 %vm537_vm2, %v1264_v46  ;;  %v1252_v61 = vsel %vm448_vm15, 1.0, %v1647_v39 }
 0x103   : > { %v211_v48 = vpop.permute.xlu1 %210 }
 0x104   : > { %vm285_vm4 = vcmp.eq.s32.totalorder %v1787_v36, %v211_v48 }
 0x108   : > { %v339_v49 = vpop.permute.xlu1 %338 }
 0x109   : > { %vm413_vm5 = vcmp.eq.s32.totalorder %v1787_v36, %v339_v49 }
 0x10a   : > { %vm445_vm6 = vmor %vm285_vm4, %vm413_vm5  ;;  %vm303_vm4 = vcmp.eq.s32.totalorder %v1787_v36, %v1846_v11 }
 0x10b   : > { %v1249_v50 = vsel %vm445_vm6, 1.0, %v1647_v39 }
 0x10c   : > { %v387_v52 = vpop.permute.xlu1 %386  ;;  %1388 = vmatprep.mubr.msk.f32.mxu0 %vm537_vm2, %v1249_v50 }
 0x10d   : > { %vm429_vm8 = vcmp.eq.s32.totalorder %v1787_v36, %v387_v52  ;;  %1389 = vmatmul.mubr.msk.f32.gmra.mxu0 %vm537_vm2, %v1250_v51 }
 0x10e   : > { %vm461_vm9 = vmor %vm301_vm7, %vm429_vm8 }
 0x10f   : > { %v1265_v53 = vsel %vm461_vm9, 1.0, %v1647_v39 }
 0x110   : > { %1412 = vmatprep.mubr.msk.f32.mxu1 %vm537_vm2, %v1265_v53 }
 0x111   : > { %v262_v54 = vpop.permute.xlu1 %261 }
 0x112   : > { %vm302_vm10 = vcmp.eq.s32.totalorder %v1787_v36, %v262_v54 }
 0x116   : > { %v390_v55 = vpop.permute.xlu1 %389 }
 0x117   : > { %vm430_vm11 = vcmp.eq.s32.totalorder %v1787_v36, %v390_v55 }
 0x118   : > { %vm462_vm12 = vmor %vm302_vm10, %vm430_vm11  ;;  %vm418_vm10 = vcmp.eq.s32.totalorder %v1787_v36, %v354_v5  ;;  %vm290_vm11 = vcmp.eq.s32.totalorder %v1787_v36, %v1859_v1 }
 0x119   : > { %v1266_v56 = vsel %vm462_vm12, 1.0, %v1647_v39  ;;  %vm450_vm12 = vmor %vm290_vm11, %vm418_vm10 }
 0x11a   : > { %1413 = vmatmul.mubr.msk.f32.gmra.mxu1 %vm537_vm2, %v1266_v56  ;;  %v1254_v9 = vsel %vm450_vm12, 1.0, %v1647_v39 }
 0x11b   : > { %v217_v58 = vpop.permute.xlu1 %216 }
 0x11c   : > { %vm287_vm0 = vcmp.eq.s32.totalorder %v1787_v36, %v217_v58 }
 0x120   : > { %v345_v59 = vpop.permute.xlu1 %344 }
 0x121   : > { %vm415_vm1 = vcmp.eq.s32.totalorder %v1787_v36, %v345_v59 }
 0x122   : > { %vm447_vm3 = vmor %vm287_vm0, %vm415_vm1  ;;  %vm305_vm0 = vcmp.eq.s32.totalorder %v1787_v36, %v1855_v15 }
 0x123   : > { %v1251_v60 = vsel %vm447_vm3, 1.0, %v1647_v39 }
 0x124   : > { %v393_v62 = vpop.permute.xlu1 %392  ;;  %1391 = vmatprep.mubr.msk.f32.mxu0 %vm537_vm2, %v1251_v60 }
 0x125   : > { %vm431_vm5 = vcmp.eq.s32.totalorder %v1787_v36, %v393_v62  ;;  %1392 = vmatmul.mubr.msk.f32.gmra.mxu0 %vm537_vm2, %v1252_v61 }
 0x126   : > { %vm463_vm6 = vmor %vm303_vm4, %vm431_vm5 }
 0x127   : > { %v1267_v63 = vsel %vm463_vm6, 1.0, %v1647_v39 }
 0x128   : > { %1415 = vmatprep.mubr.msk.f32.mxu1 %vm537_vm2, %v1267_v63 }
 0x129   : > { %v268_v2 = vpop.permute.xlu1 %267 }
 0x12a   : > { %vm304_vm7 = vcmp.eq.s32.totalorder %v1787_v36, %v268_v2 }
 0x12e   : > { %v396_v3 = vpop.permute.xlu1 %395 }
 0x12f   : > { %vm432_vm8 = vcmp.eq.s32.totalorder %v1787_v36, %v396_v3 }
 0x130   : > { %vm464_vm9 = vmor %vm304_vm7, %vm432_vm8  ;;  %vm859_vm7 = vcmask 277504  }
 0x131   : > { %v1268_v4 = vsel %vm464_vm9, 1.0, %v1647_v39 }
 0x132   : > { %1416 = vmatmul.mubr.msk.f32.gmra.mxu1 %vm537_vm2, %v1268_v4 }
 0x133   : > { %v223_v6 = vpop.permute.xlu1 %222 }
 0x134   : > { %vm289_vm13 = vcmp.eq.s32.totalorder %v1787_v36, %v223_v6 }
 0x138   : > { %v351_v7 = vpop.permute.xlu1 %350 }
 0x139   : > { %vm417_vm14 = vcmp.eq.s32.totalorder %v1787_v36, %v351_v7 }
 0x13a   : > { %vm449_vm15 = vmor %vm289_vm13, %vm417_vm14 }
 0x13b   : > { %v1253_v8 = vsel %vm449_vm15, 1.0, %v1647_v39 }
 0x13c   : > { %v399_v10 = vpop.permute.xlu1 %398  ;;  %1394 = vmatprep.mubr.msk.f32.mxu0 %vm537_vm2, %v1253_v8 }
 0x13d   : > { %vm433_vm1 = vcmp.eq.s32.totalorder %v1787_v36, %v399_v10  ;;  %1395 = vmatmul.mubr.msk.f32.gmra.mxu0 %vm537_vm2, %v1254_v9 }
 0x13e   : > { %vm465_vm3 = vmor %vm305_vm0, %vm433_vm1 }
 0x13f   : > { %v1269_v11 = vsel %vm465_vm3, 1.0, %v1647_v39 }
 0x140   : > { %1418 = vmatprep.mubr.msk.f32.mxu1 %vm537_vm2, %v1269_v11 }
 0x141   : > { %v274_v12 = vpop.permute.xlu1 %273 }
 0x142   : > { %vm306_vm4 = vcmp.eq.s32.totalorder %v1787_v36, %v274_v12 }
 0x146   : > { %v402_v13 = vpop.permute.xlu1 %401 }
 0x147   : > { %vm434_vm5 = vcmp.eq.s32.totalorder %v1787_v36, %v402_v13 }
 0x148   : > { %vm466_vm6 = vmor %vm306_vm4, %vm434_vm5 }
 0x149   : > { %v1270_v14 = vsel %vm466_vm6, 1.0, %v1647_v39 }
 0x14a   : > { %1419 = vmatmul.mubr.msk.f32.gmra.mxu1 %vm537_vm2, %v1270_v14 }
 0x162   : > { %v1399_v15 = vpop.f32.mrf.mxu1 }
 0x163   : > { %877 = vst.msk [vmem:[%s1978_s14 + $0x88] sm:$0xff] %vm859_vm7, %v1399_v15 }
 0x164   : > { %v780_v36 = vpop.f32.mrf.mxu1 }
 0x165   : > { %876 = vst.msk [vmem:[%s1978_s14 + $0x80] sm:$0xff] %vm859_vm7, %v780_v36 }
 0x17a   : > { %v1402_v39 = vpop.f32.mrf.mxu1 }
 0x17b   : > { %879 = vst.msk [vmem:[%s1978_s14 + $0x98] sm:$0xff] %vm859_vm7, %v1402_v39 }
 0x17c   : > { %v790_v16 = vpop.f32.mrf.mxu1 }
 0x17d   : > { %878 = vst.msk [vmem:[%s1978_s14 + $0x90] sm:$0xff] %vm859_vm7, %v790_v16 }
 0x192   : > { %v1405_v1 = vpop.f32.mrf.mxu1 }
 0x193   : > { %881 = vst.msk [vmem:[%s1978_s14 + $0xa8] sm:$0xff] %vm859_vm7, %v1405_v1 }
 0x194   : > { %v800_v17 = vpop.f32.mrf.mxu1 }
 0x195   : > { %880 = vst.msk [vmem:[%s1978_s14 + $0xa0] sm:$0xff] %vm859_vm7, %v800_v17 }
 0x199   : > { %v1375_v18 = vpop.f32.mrf.mxu0 }
 0x19a   : > { %861 = vst.msk [vmem:[%s1978_s14 + $0x8] sm:$0xff] %vm859_vm7, %v1375_v18 }
 0x19b   : > { %v700_v0 = vpop.f32.mrf.mxu0 }
 0x19c   : > { %860 = vst.msk [vmem:[%s1978_s14] sm:$0xff] %vm859_vm7, %v700_v0 }
 0x19d   : > { %v1378_v19 = vpop.f32.mrf.mxu0 }
 0x19e   : > { %863 = vst.msk [vmem:[%s1978_s14 + $0x18] sm:$0xff] %vm859_vm7, %v1378_v19 }
 0x19f   : > { %v710_v20 = vpop.f32.mrf.mxu0 }
 0x1a0   : > { %862 = vst.msk [vmem:[%s1978_s14 + $0x10] sm:$0xff] %vm859_vm7, %v710_v20 }
 0x1a1   : > { %v1381_v21 = vpop.f32.mrf.mxu0 }
 0x1a2   : > { %865 = vst.msk [vmem:[%s1978_s14 + $0x28] sm:$0xff] %vm859_vm7, %v1381_v21 }
 0x1a3   : > { %v720_v22 = vpop.f32.mrf.mxu0 }
 0x1a4   : > { %864 = vst.msk [vmem:[%s1978_s14 + $0x20] sm:$0xff] %vm859_vm7, %v720_v22 }
 0x1a5   : > { %v1384_v23 = vpop.f32.mrf.mxu0 }
 0x1a6   : > { %867 = vst.msk [vmem:[%s1978_s14 + $0x38] sm:$0xff] %vm859_vm7, %v1384_v23 }
 0x1a7   : > { %v730_v24 = vpop.f32.mrf.mxu0 }
 0x1a8   : > { %866 = vst.msk [vmem:[%s1978_s14 + $0x30] sm:$0xff] %vm859_vm7, %v730_v24 }
 0x1aa   : > { %v1408_v25 = vpop.f32.mrf.mxu1 }
 0x1ab   : > { %883 = vst.msk [vmem:[%s1978_s14 + $0xb8] sm:$0xff] %vm859_vm7, %v1408_v25 }
 0x1ac   : > { %v810_v26 = vpop.f32.mrf.mxu1 }
 0x1ad   : > { %882 = vst.msk [vmem:[%s1978_s14 + $0xb0] sm:$0xff] %vm859_vm7, %v810_v26 }
 0x1b5   : > { %v1387_v27 = vpop.f32.mrf.mxu0 }
 0x1b6   : > { %869 = vst.msk [vmem:[%s1978_s14 + $0x48] sm:$0xff] %vm859_vm7, %v1387_v27 }
 0x1b7   : > { %v740_v28 = vpop.f32.mrf.mxu0 }
 0x1b8   : > { %868 = vst.msk [vmem:[%s1978_s14 + $0x40] sm:$0xff] %vm859_vm7, %v740_v28 }
 0x1c2   : > { %v1411_v29 = vpop.f32.mrf.mxu1 }
 0x1c3   : > { %885 = vst.msk [vmem:[%s1978_s14 + $0xc8] sm:$0xff] %vm859_vm7, %v1411_v29 }
 0x1c4   : > { %v820_v30 = vpop.f32.mrf.mxu1 }
 0x1c5   : > { %884 = vst.msk [vmem:[%s1978_s14 + $0xc0] sm:$0xff] %vm859_vm7, %v820_v30 }
 0x1cd   : > { %v1390_v31 = vpop.f32.mrf.mxu0 }
 0x1ce   : > { %871 = vst.msk [vmem:[%s1978_s14 + $0x58] sm:$0xff] %vm859_vm7, %v1390_v31 }
 0x1cf   : > { %v750_v32 = vpop.f32.mrf.mxu0 }
 0x1d0   : > { %870 = vst.msk [vmem:[%s1978_s14 + $0x50] sm:$0xff] %vm859_vm7, %v750_v32 }
 0x1da   : > { %v1414_v33 = vpop.f32.mrf.mxu1 }
 0x1db   : > { %887 = vst.msk [vmem:[%s1978_s14 + $0xd8] sm:$0xff] %vm859_vm7, %v1414_v33 }
 0x1dc   : > { %v830_v34 = vpop.f32.mrf.mxu1 }
 0x1dd   : > { %886 = vst.msk [vmem:[%s1978_s14 + $0xd0] sm:$0xff] %vm859_vm7, %v830_v34 }
 0x1e5   : > { %v1393_v35 = vpop.f32.mrf.mxu0 }
 0x1e6   : > { %873 = vst.msk [vmem:[%s1978_s14 + $0x68] sm:$0xff] %vm859_vm7, %v1393_v35 }
 0x1e7   : > { %v760_v37 = vpop.f32.mrf.mxu0 }
 0x1e8   : > { %872 = vst.msk [vmem:[%s1978_s14 + $0x60] sm:$0xff] %vm859_vm7, %v760_v37 }
 0x1f2   : > { %v1417_v38 = vpop.f32.mrf.mxu1 }
 0x1f3   : > { %889 = vst.msk [vmem:[%s1978_s14 + $0xe8] sm:$0xff] %vm859_vm7, %v1417_v38 }
 0x1f4   : > { %v840_v40 = vpop.f32.mrf.mxu1 }
 0x1f5   : > { %888 = vst.msk [vmem:[%s1978_s14 + $0xe0] sm:$0xff] %vm859_vm7, %v840_v40 }
 0x1fd   : > { %v1396_v41 = vpop.f32.mrf.mxu0 }
 0x1fe   : > { %875 = vst.msk [vmem:[%s1978_s14 + $0x78] sm:$0xff] %vm859_vm7, %v1396_v41 }
 0x1ff   : > { %v770_v42 = vpop.f32.mrf.mxu0 }
 0x200   : > { %874 = vst.msk [vmem:[%s1978_s14 + $0x70] sm:$0xff] %vm859_vm7, %v770_v42 }
 0x209   : > { %898 = sbr.rel (!%p1688_p4) target bundleno = 574 (0x23e), region = 32 }
 0x20a   : > { %v1420_v43 = vpop.f32.mrf.mxu1 }
 0x20b   : > { %891 = vst.msk [vmem:[%s1978_s14 + $0xf8] sm:$0xff] %vm859_vm7, %v1420_v43 }
 0x20c   : > { %v850_v44 = vpop.f32.mrf.mxu1 }
 0x20d   : > { %890 = vst.msk [vmem:[%s1978_s14 + $0xf0] sm:$0xff] %vm859_vm7, %v850_v44 }
 0x20e   : > { %s2196_s9 = smov (!%p901_p8, %s900_s9), 32 }
 0x20f   : > { %s1305_s22 = sshll.u32 %s2196_s9, 7 }
 0x210   : > { %p1308_p9 = scmp.eq.s32.totalorder %s1305_s22, 0 }
 0x211   : > { %s2057_s23 = sshrl.u32 (!%p1308_p9), %s2196_s9, 5 }
 0x212   : > { %909 = sbr.rel (%p1308_p9) target bundleno = 574 (0x23e), region = 36  ;;  %p1309_p10 = scmp.le.s32.totalorder (!%p1308_p9), %s2057_s23, 0 }
 0x217   : > { %1188 = sbr.rel (%p1309_p10) target bundleno = 557 (0x22d), region = 112  ;;  %s2187_s12 = smov (!%p1309_p10), %s2051_s21 }
 0x218   : > { %s2188_s17 = smov (!%p1309_p10), %s1978_s14  ;;  %s2066_s18 = smov (!%p1309_p10), 0  }
 0x219   : > { %s2068_s24 = smov (!%p1309_p10), 0  }
 0x21c LB: >> { %v1034_v45 = vld [vmem:[%s1619_s17] sm:$0xff]  ;;  %v1036_v46 = vld [vmem:[%s1619_s17 + $0x8] sm:$0xff]  ;;  %v1038_v47 = vld [vmem:[%s1619_s17 + $0x10] sm:$0xff]  ;;  %s1098_s25 = sadd.s32 1, %s1623_s18  ;;  %s1028_s24 = sadd.s32 1, %s1627_s24   ;;  %s1627_s24 = sphi %s2068_s24, %s1028_s24   ;;  %s1623_s18 = sphi %s2066_s18, %s2191_s18   ;;  %s1619_s17 = sphi %s2188_s17, %s2190_s17   ;;  %s1615_s12 = sphi %s2187_s12, %s2189_s12  }
 0x21d   : >> { %1035 = vst [vmem:[%s1615_s12] sm:$0xff] %v1034_v45  ;;  %1037 = vst [vmem:[%s1615_s12 + $0x8] sm:$0xff] %v1036_v46  ;;  %v1040_v48 = vld [vmem:[%s1619_s17 + $0x18] sm:$0xff]  ;;  %v1042_v49 = vld [vmem:[%s1619_s17 + $0x20] sm:$0xff]  ;;  %p1099_p11 = scmp.ge.s32.totalorder %s1098_s25, %s2057_s23  ;;  %p1027_p12 = scmp.ge.s32.totalorder %s1028_s24, %s2057_s23 }
 0x21e   : >> { %1039 = vst [vmem:[%s1615_s12 + $0x10] sm:$0xff] %v1038_v47  ;;  %v1044_v50 = vld [vmem:[%s1619_s17 + $0x28] sm:$0xff]  ;;  %1041 = vst [vmem:[%s1615_s12 + $0x18] sm:$0xff] %v1040_v48  ;;  %v1046_v51 = vld [vmem:[%s1619_s17 + $0x30] sm:$0xff] }
 0x21f   : >> { %1043 = vst [vmem:[%s1615_s12 + $0x20] sm:$0xff] %v1042_v49  ;;  %1045 = vst [vmem:[%s1615_s12 + $0x28] sm:$0xff] %v1044_v50  ;;  %v1048_v52 = vld [vmem:[%s1619_s17 + $0x38] sm:$0xff]  ;;  %v1050_v53 = vld [vmem:[%s1619_s17 + $0x40] sm:$0xff]  ;;  %s2198_s25 = smov (%p1099_p11, %s1098_s25), 0 }
 0x220   : >> { %1047 = vst [vmem:[%s1615_s12 + $0x30] sm:$0xff] %v1046_v51  ;;  %1049 = vst [vmem:[%s1615_s12 + $0x38] sm:$0xff] %v1048_v52  ;;  %v1052_v54 = vld [vmem:[%s1619_s17 + $0x48] sm:$0xff]  ;;  %v1054_v55 = vld [vmem:[%s1619_s17 + $0x50] sm:$0xff]  ;;  %s1310_s26 = sshll.u32 %s2198_s25, 8  ;;  %s2191_s18 = smov %s2198_s25 }
 0x221   : >> { %1051 = vst [vmem:[%s1615_s12 + $0x40] sm:$0xff] %v1050_v53  ;;  %v1056_v56 = vld [vmem:[%s1619_s17 + $0x58] sm:$0xff]  ;;  %1053 = vst [vmem:[%s1615_s12 + $0x48] sm:$0xff] %v1052_v54  ;;  %v1058_v57 = vld [vmem:[%s1619_s17 + $0x60] sm:$0xff]  ;;  %s2124_s27 = scalar_lea.vmem %s1978_s14, %s1310_s26 [#allocation2]   ;;  %s1104_s28 = scalar_lea.vmem %s2051_s21, %s1310_s26  }
 0x222   : >> { %1055 = vst [vmem:[%s1615_s12 + $0x50] sm:$0xff] %v1054_v55  ;;  %1057 = vst [vmem:[%s1615_s12 + $0x58] sm:$0xff] %v1056_v56  ;;  %v1060_v58 = vld [vmem:[%s1619_s17 + $0x68] sm:$0xff]  ;;  %v1062_v59 = vld [vmem:[%s1619_s17 + $0x70] sm:$0xff] }
 0x223   : >> { %1059 = vst [vmem:[%s1615_s12 + $0x60] sm:$0xff] %v1058_v57  ;;  %1061 = vst [vmem:[%s1615_s12 + $0x68] sm:$0xff] %v1060_v58  ;;  %v1064_v60 = vld [vmem:[%s1619_s17 + $0x78] sm:$0xff]  ;;  %v1066_v61 = vld [vmem:[%s1619_s17 + $0x80] sm:$0xff] }
 0x224   : >> { %1063 = vst [vmem:[%s1615_s12 + $0x70] sm:$0xff] %v1062_v59  ;;  %v1068_v62 = vld [vmem:[%s1619_s17 + $0x88] sm:$0xff]  ;;  %1065 = vst [vmem:[%s1615_s12 + $0x78] sm:$0xff] %v1064_v60  ;;  %v1070_v63 = vld [vmem:[%s1619_s17 + $0x90] sm:$0xff] }
 0x225   : >> { %1067 = vst [vmem:[%s1615_s12 + $0x80] sm:$0xff] %v1066_v61  ;;  %1069 = vst [vmem:[%s1615_s12 + $0x88] sm:$0xff] %v1068_v62  ;;  %v1072_v2 = vld [vmem:[%s1619_s17 + $0x98] sm:$0xff]  ;;  %v1074_v3 = vld [vmem:[%s1619_s17 + $0xa0] sm:$0xff] }
 0x226   : >> { %1071 = vst [vmem:[%s1615_s12 + $0x90] sm:$0xff] %v1070_v63  ;;  %1073 = vst [vmem:[%s1615_s12 + $0x98] sm:$0xff] %v1072_v2  ;;  %v1076_v4 = vld [vmem:[%s1619_s17 + $0xa8] sm:$0xff]  ;;  %v1078_v5 = vld [vmem:[%s1619_s17 + $0xb0] sm:$0xff] }
 0x227   : >> { %1075 = vst [vmem:[%s1615_s12 + $0xa0] sm:$0xff] %v1074_v3  ;;  %v1080_v6 = vld [vmem:[%s1619_s17 + $0xb8] sm:$0xff]  ;;  %1077 = vst [vmem:[%s1615_s12 + $0xa8] sm:$0xff] %v1076_v4  ;;  %v1082_v7 = vld [vmem:[%s1619_s17 + $0xc0] sm:$0xff] }
 0x228   : >> { %1079 = vst [vmem:[%s1615_s12 + $0xb0] sm:$0xff] %v1078_v5  ;;  %1081 = vst [vmem:[%s1615_s12 + $0xb8] sm:$0xff] %v1080_v6  ;;  %v1084_v8 = vld [vmem:[%s1619_s17 + $0xc8] sm:$0xff]  ;;  %v1086_v9 = vld [vmem:[%s1619_s17 + $0xd0] sm:$0xff]  ;;  %1030 = sbr.rel (!%p1027_p12) target bundleno = 540 (0x21c), region = 118 }
 0x229   : >> { %1083 = vst [vmem:[%s1615_s12 + $0xc0] sm:$0xff] %v1082_v7  ;;  %1085 = vst [vmem:[%s1615_s12 + $0xc8] sm:$0xff] %v1084_v8  ;;  %v1088_v10 = vld [vmem:[%s1619_s17 + $0xd8] sm:$0xff]  ;;  %v1090_v11 = vld [vmem:[%s1619_s17 + $0xe0] sm:$0xff] }
 0x22a   : >> { %1087 = vst [vmem:[%s1615_s12 + $0xd0] sm:$0xff] %v1086_v9  ;;  %v1092_v12 = vld [vmem:[%s1619_s17 + $0xe8] sm:$0xff]  ;;  %1089 = vst [vmem:[%s1615_s12 + $0xd8] sm:$0xff] %v1088_v10  ;;  %v1094_v13 = vld [vmem:[%s1619_s17 + $0xf0] sm:$0xff] }
 0x22b   : >> { %1091 = vst [vmem:[%s1615_s12 + $0xe0] sm:$0xff] %v1090_v11  ;;  %1093 = vst [vmem:[%s1615_s12 + $0xe8] sm:$0xff] %v1092_v12  ;;  %v1096_v14 = vld [vmem:[%s1619_s17 + $0xf8] sm:$0xff]  ;;  %s2190_s17 = smov %s2124_s27 }
 0x22c   : >> { %1095 = vst [vmem:[%s1615_s12 + $0xf0] sm:$0xff] %v1094_v13  ;;  %1097 = vst [vmem:[%s1615_s12 + $0xf8] sm:$0xff] %v1096_v14  ;;  %s2189_s12 = smov %s1104_s28 }
 0x22d PF: > { %s2165_s29 = sand.u32 31, %s2196_s9   ;;  %s1321_s30 = sshll.u32 %s2057_s23, 8 }
 0x22e   : > { %s1109_s3 = scalar_lea.vmem %s1978_s14, %s1321_s30 [#allocation2]   ;;  %s1111_s4 = scalar_lea.vmem %s2051_s21, %s1321_s30  }
 0x22f   : > { %p1315_p13 = scmp.le.s32.totalorder %s2165_s29, 0 }
 0x230   : > { %s1629_s5 = smov (!%p1315_p13), %s1111_s4   ;;  %s1633_s6 = smov (!%p1315_p13), %s1109_s3  }
 0x231   : > { %1202 = sbr.rel (%p1315_p13) target bundleno = 574 (0x23e), region = 123  ;;  %s1637_s7 = smov (!%p1315_p13), 0  }
 0x232   : > { %s1641_s8 = smov (!%p1315_p13), 0  }
 0x236 LB: >> { %v1121_v15 = vld [vmem:[%s1635_s6] sm:$0xff]  ;;  %s1123_s11 = sadd.s32 1, %s1639_s7  ;;  %s1115_s8 = sadd.s32 1, %s1643_s8   ;;  %s1643_s8 = sphi %s1641_s8, %s1115_s8   ;;  %s1639_s7 = sphi %s1637_s7, %s1638_s7   ;;  %s1635_s6 = sphi %s1633_s6, %s1128_s6   ;;  %s1631_s5 = sphi %s1629_s5, %s1129_s5  }
 0x237   : >> { %1122 = vst [vmem:[%s1631_s5] sm:$0xff] %v1121_v15  ;;  %p1124_p0 = scmp.ge.s32.totalorder %s1123_s11, %s2165_s29  ;;  %p1114_p1 = scmp.ge.s32.totalorder %s1115_s8, %s2165_s29 }
 0x239   : >> { %s2200_s11 = smov (%p1124_p0, %s1123_s11), 0  ;;  %1117 = sbr.rel (!%p1114_p1) target bundleno = 566 (0x236), region = 129 }
 0x23a   : >> { %s1316_s14 = sshll.u32 %s2200_s11, 3  ;;  %s1638_s7 = smov %s2200_s11  }
 0x23b   : >> { %s1128_s6 = scalar_lea.vmem %s1109_s3, %s1316_s14 [#allocation2]   ;;  %s1129_s5 = scalar_lea.vmem %s1111_s4, %s1316_s14  }
 0x23e PF: > { %p9_p2 = scmp.ge.s32.totalorder %s1678_s13, 6   ;;  %s2192_s9 = smov %s1607_s10 }
 0x23f   : > { %s2193_s10 = smov %s1686_s16  ;;  %s2194_s11 = smov %s1678_s13 }
 0x240   :  { %11 = sbr.rel (!%p9_p2) target bundleno = 2 (0x2), region = 140 }

</bundles_post_ra>
